<compile_context>
chip_gen: v7x
topology: tpu7x:2x2x1
jax: 0.10.0
libtpu: 0.0.40
codegen_flags: <defaults>
</compile_context>

<pallas_src>
import functools

import jax
import jax.numpy as jnp
from jax.experimental import pallas as pl
from jax.experimental.pallas import tpu as pltpu


def lstm_kernel(xp_ref, w_hh_ref, w_fc_ref, b_fc_ref, out_ref, *,
                hidden, seq_len, unroll):
    H = hidden
    B = out_ref.shape[0]
    w_hh = w_hh_ref[...]                     # (H, 4H), loaded once, resident

    def step(t, carry):
        h, c = carry
        # (B, 4H): precomputed input projection (incl. biases) + recurrent matmul
        gates = xp_ref[t] + jnp.dot(h, w_hh, preferred_element_type=jnp.float32)
        sig = jax.nn.sigmoid(gates)          # one full-tile EUP pass
        tnh = jnp.tanh(gates)                # one full-tile EUP pass
        i_g = sig[:, 0 * H:1 * H]
        f_g = sig[:, 1 * H:2 * H]
        g_g = tnh[:, 2 * H:3 * H]
        o_g = sig[:, 3 * H:4 * H]
        c_new = f_g * c + i_g * g_g
        h_new = o_g * jnp.tanh(c_new)
        return h_new, c_new

    h0 = jnp.zeros((B, H), jnp.float32)
    c0 = jnp.zeros((B, H), jnp.float32)
    h_n, _ = jax.lax.fori_loop(0, seq_len, step, (h0, c0), unroll=unroll)

    # fc(h_n[-1]) : (B, future_steps)
    # NOTE: future_steps=1 -> a single masked partial store; fine here. If the output
    # ever becomes wide/per-timestep, present a lane-dense (multiple-of-128) last dim.
    out_ref[...] = (jnp.dot(h_n, w_fc_ref[...], preferred_element_type=jnp.float32)
                    + b_fc_ref[...]).astype(out_ref.dtype)


def simple_lstm_forward(x, params, *, hidden, future_steps):
    """x: (B, T, D) float32, batch_first. Returns (B, future_steps)."""
    B, T, D = x.shape
    H = hidden
    w_ih, w_hh, b_ih, b_hh, w_fc, b_fc = params

    # --- hoisted input projection: one big matmul over all timesteps ---
    x_tm = jnp.transpose(x, (1, 0, 2))                        # (T, B, D) time-major
    b = (b_ih + b_hh).reshape(1, 4 * H)                       # fold the two LSTM biases
    x_proj = (x_tm.reshape(T * B, D) @ w_ih.T + b).reshape(T, B, 4 * H)
    x_proj = x_proj.astype(jnp.float32)

    # --- pre-transposed weights so the kernel never transposes ---
    w_hh_t = jnp.transpose(w_hh)                              # (H, 4H)
    w_fc_t = jnp.transpose(w_fc)                              # (H, F)
    b_fc2 = b_fc.reshape(1, future_steps)

    unroll = T <= 32   # short fixed trip count: fully unroll for LLO scheduler visibility
    kernel = functools.partial(lstm_kernel, hidden=H, seq_len=T, unroll=unroll)

    return pl.pallas_call(
        kernel,
        out_shape=jax.ShapeDtypeStruct((B, future_steps), jnp.float32),
        grid_spec=pltpu.PrefetchScalarGridSpec(
            num_scalar_prefetch=0,
            grid=(1,),                       # whole recurrence in one kernel invocation
            in_specs=[
                # full-array blocks (block_shape == array shape, so (8,128) rule is moot)
                pl.BlockSpec((T, B, 4 * H), lambda i: (0, 0, 0)),
                pl.BlockSpec((H, 4 * H), lambda i: (0, 0)),
                pl.BlockSpec((H, future_steps), lambda i: (0, 0)),
                pl.BlockSpec((1, future_steps), lambda i: (0, 0)),
            ],
            out_specs=pl.BlockSpec((B, future_steps), lambda i: (0, 0)),
        ),
        compiler_params=pltpu.CompilerParams(
            dimension_semantics=("arbitrary",)),
    )(x_proj, w_hh_t, w_fc_t, b_fc2)


def ref_forward(x, params, hidden):
    """Pure-JAX reference mirroring torch.nn.LSTM(batch_first=True) + Linear."""
    w_ih, w_hh, b_ih, b_hh, w_fc, b_fc = params
    B, T, _ = x.shape
    h = jnp.zeros((B, hidden), jnp.float32)
    c = jnp.zeros((B, hidden), jnp.float32)
    for t in range(T):
        g = x[:, t] @ w_ih.T + h @ w_hh.T + b_ih + b_hh
        i = jax.nn.sigmoid(g[:, :hidden])
        f = jax.nn.sigmoid(g[:, hidden:2 * hidden])
        gg = jnp.tanh(g[:, 2 * hidden:3 * hidden])
        o = jax.nn.sigmoid(g[:, 3 * hidden:])
        c = f * c + i * gg
        h = o * jnp.tanh(c)
    return h @ w_fc.T + b_fc


def init_params(key, input_dim, hidden, future_steps):
    """Deterministic init matching PyTorch default uniform(-1/sqrt(H), 1/sqrt(H))."""
    ks = jax.random.split(key, 6)
    k_lstm = 1.0 / jnp.sqrt(hidden)
    k_fc = 1.0 / jnp.sqrt(hidden)
    w_ih = jax.random.uniform(ks[0], (4 * hidden, input_dim), jnp.float32, -k_lstm, k_lstm)
    w_hh = jax.random.uniform(ks[1], (4 * hidden, hidden), jnp.float32, -k_lstm, k_lstm)
    b_ih = jax.random.uniform(ks[2], (4 * hidden,), jnp.float32, -k_lstm, k_lstm)
    b_hh = jax.random.uniform(ks[3], (4 * hidden,), jnp.float32, -k_lstm, k_lstm)
    w_fc = jax.random.uniform(ks[4], (future_steps, hidden), jnp.float32, -k_fc, k_fc)
    b_fc = jax.random.uniform(ks[5], (future_steps,), jnp.float32, -k_fc, k_fc)
    return (w_ih, w_hh, b_ih, b_hh, w_fc, b_fc)


if __name__ == "__main__":
    B, T, D = 2, 8, 1          # batch, seq len, input_dim
    HIDDEN = 32                # lstm_output_dim
    FUTURE = 1                 # future_steps

    key = jax.random.PRNGKey(0)
    k_x, k_p = jax.random.split(key)
    x = jax.random.normal(k_x, (B, T, D), jnp.float32)
    params = init_params(k_p, D, HIDDEN, FUTURE)

    out = simple_lstm_forward(x, params, hidden=HIDDEN, future_steps=FUTURE)
    out = jax.block_until_ready(out)

    ref = ref_forward(x, params, HIDDEN)
    assert out.shape == (B, FUTURE)
    assert jnp.allclose(out, ref, atol=1e-5, rtol=1e-5)

    print("KERNEL_OK")
</pallas_src>

<mosaic_0001>
module attributes {stable_mosaic.version = 11 : i64} {
  func.func @lstm_kernel(%arg0: i32, %arg1: memref<8x2x128xf32, #tpu.memory_space<vmem>>, %arg2: memref<32x128xf32, #tpu.memory_space<vmem>>, %arg3: memref<32x1xf32, #tpu.memory_space<vmem>>, %arg4: memref<1x1xf32, #tpu.memory_space<vmem>>, %arg5: memref<2x1xf32, #tpu.memory_space<vmem>>) attributes {dimension_semantics = [#tpu.dimension_semantics<arbitrary>], iteration_bounds = array<i64: 1>, scalar_prefetch = 0 : i64, scratch_operands = 0 : i64, tpu.core_type = #tpu.core_type<tc>, window_params = [{pipeline_mode = #tpu.pipeline_mode<synchronous>, transform_indices = @transform_0, window_bounds = array<i64: 8, 2, 128>}, {pipeline_mode = #tpu.pipeline_mode<synchronous>, transform_indices = @transform_1, window_bounds = array<i64: 32, 128>}, {pipeline_mode = #tpu.pipeline_mode<synchronous>, transform_indices = @transform_2, window_bounds = array<i64: 32, 1>}, {pipeline_mode = #tpu.pipeline_mode<synchronous>, transform_indices = @transform_3, window_bounds = array<i64: 1, 1>}, {pipeline_mode = #tpu.pipeline_mode<synchronous>, transform_indices = @transform_4, window_bounds = array<i64: 2, 1>}]} {
    %c0 = arith.constant 0 : index
    %c0_0 = arith.constant 0 : index
    %0 = vector.load %arg2[%c0, %c0_0] : memref<32x128xf32, #tpu.memory_space<vmem>>, vector<32x128xf32>
    %cst = arith.constant 0.000000e+00 : f32
    %1 = vector.broadcast %cst : f32 to vector<2x32xf32>
    %cst_1 = arith.constant 0.000000e+00 : f32
    %2 = vector.broadcast %cst_1 : f32 to vector<2x32xf32>
    %c0_i32 = arith.constant 0 : i32
    %3 = arith.index_cast %c0_i32 : i32 to index
    %c0_2 = arith.constant 0 : index
    %c0_3 = arith.constant 0 : index
    %4 = vector.load %arg1[%3, %c0_2, %c0_3] : memref<8x2x128xf32, #tpu.memory_space<vmem>>, vector<1x2x128xf32>
    %5 = vector.shape_cast %4 : vector<1x2x128xf32> to vector<2x128xf32>
    %cst_4 = arith.constant dense<0.000000e+00> : vector<2x128xf32>
    %6 = tpu.matmul %1, %0, %cst_4 {dimension_numbers = #tpu.dot_dimension_numbers<[1], [0], [0], [1], [0, 0, 1, 1], [], []>} : vector<2x32xf32>, vector<32x128xf32>, vector<2x128xf32> -> vector<2x128xf32>
    %7 = arith.addf %5, %6 : vector<2x128xf32>
    %8 = arith.negf %7 : vector<2x128xf32>
    %9 = math.exp %8 : vector<2x128xf32>
    %cst_5 = arith.constant 1.000000e+00 : f32
    %10 = vector.broadcast %cst_5 : f32 to vector<2x128xf32>
    %11 = arith.addf %10, %9 : vector<2x128xf32>
    %12 = arith.divf %10, %11 : vector<2x128xf32>
    %13 = math.tanh %7 : vector<2x128xf32>
    %14 = vector.extract_strided_slice %12 {offsets = [0, 0], sizes = [2, 32], strides = [1, 1]} : vector<2x128xf32> to vector<2x32xf32>
    %15 = vector.extract_strided_slice %12 {offsets = [0, 32], sizes = [2, 32], strides = [1, 1]} : vector<2x128xf32> to vector<2x32xf32>
    %16 = vector.extract_strided_slice %13 {offsets = [0, 64], sizes = [2, 32], strides = [1, 1]} : vector<2x128xf32> to vector<2x32xf32>
    %17 = vector.extract_strided_slice %12 {offsets = [0, 96], sizes = [2, 32], strides = [1, 1]} : vector<2x128xf32> to vector<2x32xf32>
    %18 = arith.mulf %15, %2 : vector<2x32xf32>
    %19 = arith.mulf %14, %16 : vector<2x32xf32>
    %20 = arith.addf %18, %19 : vector<2x32xf32>
    %21 = math.tanh %20 : vector<2x32xf32>
    %22 = arith.mulf %17, %21 : vector<2x32xf32>
    %c1_i32 = arith.constant 1 : i32
    %23 = arith.index_cast %c1_i32 : i32 to index
    %c0_6 = arith.constant 0 : index
    %c0_7 = arith.constant 0 : index
    %24 = vector.load %arg1[%23, %c0_6, %c0_7] : memref<8x2x128xf32, #tpu.memory_space<vmem>>, vector<1x2x128xf32>
    %25 = vector.shape_cast %24 : vector<1x2x128xf32> to vector<2x128xf32>
    %cst_8 = arith.constant dense<0.000000e+00> : vector<2x128xf32>
    %26 = tpu.matmul %22, %0, %cst_8 {dimension_numbers = #tpu.dot_dimension_numbers<[1], [0], [0], [1], [0, 0, 1, 1], [], []>} : vector<2x32xf32>, vector<32x128xf32>, vector<2x128xf32> -> vector<2x128xf32>
    %27 = arith.addf %25, %26 : vector<2x128xf32>
    %28 = arith.negf %27 : vector<2x128xf32>
    %29 = math.exp %28 : vector<2x128xf32>
    %cst_9 = arith.constant 1.000000e+00 : f32
    %30 = vector.broadcast %cst_9 : f32 to vector<2x128xf32>
    %31 = arith.addf %30, %29 : vector<2x128xf32>
    %32 = arith.divf %30, %31 : vector<2x128xf32>
    %33 = math.tanh %27 : vector<2x128xf32>
    %34 = vector.extract_strided_slice %32 {offsets = [0, 0], sizes = [2, 32], strides = [1, 1]} : vector<2x128xf32> to vector<2x32xf32>
    %35 = vector.extract_strided_slice %32 {offsets = [0, 32], sizes = [2, 32], strides = [1, 1]} : vector<2x128xf32> to vector<2x32xf32>
    %36 = vector.extract_strided_slice %33 {offsets = [0, 64], sizes = [2, 32], strides = [1, 1]} : vector<2x128xf32> to vector<2x32xf32>
    %37 = vector.extract_strided_slice %32 {offsets = [0, 96], sizes = [2, 32], strides = [1, 1]} : vector<2x128xf32> to vector<2x32xf32>
    %38 = arith.mulf %35, %20 : vector<2x32xf32>
    %39 = arith.mulf %34, %36 : vector<2x32xf32>
    %40 = arith.addf %38, %39 : vector<2x32xf32>
    %41 = math.tanh %40 : vector<2x32xf32>
    %42 = arith.mulf %37, %41 : vector<2x32xf32>
    %c2_i32 = arith.constant 2 : i32
    %43 = arith.index_cast %c2_i32 : i32 to index
    %c0_10 = arith.constant 0 : index
    %c0_11 = arith.constant 0 : index
    %44 = vector.load %arg1[%43, %c0_10, %c0_11] : memref<8x2x128xf32, #tpu.memory_space<vmem>>, vector<1x2x128xf32>
    %45 = vector.shape_cast %44 : vector<1x2x128xf32> to vector<2x128xf32>
    %cst_12 = arith.constant dense<0.000000e+00> : vector<2x128xf32>
    %46 = tpu.matmul %42, %0, %cst_12 {dimension_numbers = #tpu.dot_dimension_numbers<[1], [0], [0], [1], [0, 0, 1, 1], [], []>} : vector<2x32xf32>, vector<32x128xf32>, vector<2x128xf32> -> vector<2x128xf32>
    %47 = arith.addf %45, %46 : vector<2x128xf32>
    %48 = arith.negf %47 : vector<2x128xf32>
    %49 = math.exp %48 : vector<2x128xf32>
    %cst_13 = arith.constant 1.000000e+00 : f32
    %50 = vector.broadcast %cst_13 : f32 to vector<2x128xf32>
    %51 = arith.addf %50, %49 : vector<2x128xf32>
    %52 = arith.divf %50, %51 : vector<2x128xf32>
    %53 = math.tanh %47 : vector<2x128xf32>
    %54 = vector.extract_strided_slice %52 {offsets = [0, 0], sizes = [2, 32], strides = [1, 1]} : vector<2x128xf32> to vector<2x32xf32>
    %55 = vector.extract_strided_slice %52 {offsets = [0, 32], sizes = [2, 32], strides = [1, 1]} : vector<2x128xf32> to vector<2x32xf32>
    %56 = vector.extract_strided_slice %53 {offsets = [0, 64], sizes = [2, 32], strides = [1, 1]} : vector<2x128xf32> to vector<2x32xf32>
    %57 = vector.extract_strided_slice %52 {offsets = [0, 96], sizes = [2, 32], strides = [1, 1]} : vector<2x128xf32> to vector<2x32xf32>
    %58 = arith.mulf %55, %40 : vector<2x32xf32>
    %59 = arith.mulf %54, %56 : vector<2x32xf32>
    %60 = arith.addf %58, %59 : vector<2x32xf32>
    %61 = math.tanh %60 : vector<2x32xf32>
    %62 = arith.mulf %57, %61 : vector<2x32xf32>
    %c3_i32 = arith.constant 3 : i32
    %63 = arith.index_cast %c3_i32 : i32 to index
    %c0_14 = arith.constant 0 : index
    %c0_15 = arith.constant 0 : index
    %64 = vector.load %arg1[%63, %c0_14, %c0_15] : memref<8x2x128xf32, #tpu.memory_space<vmem>>, vector<1x2x128xf32>
    %65 = vector.shape_cast %64 : vector<1x2x128xf32> to vector<2x128xf32>
    %cst_16 = arith.constant dense<0.000000e+00> : vector<2x128xf32>
    %66 = tpu.matmul %62, %0, %cst_16 {dimension_numbers = #tpu.dot_dimension_numbers<[1], [0], [0], [1], [0, 0, 1, 1], [], []>} : vector<2x32xf32>, vector<32x128xf32>, vector<2x128xf32> -> vector<2x128xf32>
    %67 = arith.addf %65, %66 : vector<2x128xf32>
    %68 = arith.negf %67 : vector<2x128xf32>
    %69 = math.exp %68 : vector<2x128xf32>
    %cst_17 = arith.constant 1.000000e+00 : f32
    %70 = vector.broadcast %cst_17 : f32 to vector<2x128xf32>
    %71 = arith.addf %70, %69 : vector<2x128xf32>
    %72 = arith.divf %70, %71 : vector<2x128xf32>
    %73 = math.tanh %67 : vector<2x128xf32>
    %74 = vector.extract_strided_slice %72 {offsets = [0, 0], sizes = [2, 32], strides = [1, 1]} : vector<2x128xf32> to vector<2x32xf32>
    %75 = vector.extract_strided_slice %72 {offsets = [0, 32], sizes = [2, 32], strides = [1, 1]} : vector<2x128xf32> to vector<2x32xf32>
    %76 = vector.extract_strided_slice %73 {offsets = [0, 64], sizes = [2, 32], strides = [1, 1]} : vector<2x128xf32> to vector<2x32xf32>
    %77 = vector.extract_strided_slice %72 {offsets = [0, 96], sizes = [2, 32], strides = [1, 1]} : vector<2x128xf32> to vector<2x32xf32>
    %78 = arith.mulf %75, %60 : vector<2x32xf32>
    %79 = arith.mulf %74, %76 : vector<2x32xf32>
    %80 = arith.addf %78, %79 : vector<2x32xf32>
    %81 = math.tanh %80 : vector<2x32xf32>
    %82 = arith.mulf %77, %81 : vector<2x32xf32>
    %c4_i32 = arith.constant 4 : i32
    %83 = arith.index_cast %c4_i32 : i32 to index
    %c0_18 = arith.constant 0 : index
    %c0_19 = arith.constant 0 : index
    %84 = vector.load %arg1[%83, %c0_18, %c0_19] : memref<8x2x128xf32, #tpu.memory_space<vmem>>, vector<1x2x128xf32>
    %85 = vector.shape_cast %84 : vector<1x2x128xf32> to vector<2x128xf32>
    %cst_20 = arith.constant dense<0.000000e+00> : vector<2x128xf32>
    %86 = tpu.matmul %82, %0, %cst_20 {dimension_numbers = #tpu.dot_dimension_numbers<[1], [0], [0], [1], [0, 0, 1, 1], [], []>} : vector<2x32xf32>, vector<32x128xf32>, vector<2x128xf32> -> vector<2x128xf32>
    %87 = arith.addf %85, %86 : vector<2x128xf32>
    %88 = arith.negf %87 : vector<2x128xf32>
    %89 = math.exp %88 : vector<2x128xf32>
    %cst_21 = arith.constant 1.000000e+00 : f32
    %90 = vector.broadcast %cst_21 : f32 to vector<2x128xf32>
    %91 = arith.addf %90, %89 : vector<2x128xf32>
    %92 = arith.divf %90, %91 : vector<2x128xf32>
    %93 = math.tanh %87 : vector<2x128xf32>
    %94 = vector.extract_strided_slice %92 {offsets = [0, 0], sizes = [2, 32], strides = [1, 1]} : vector<2x128xf32> to vector<2x32xf32>
    %95 = vector.extract_strided_slice %92 {offsets = [0, 32], sizes = [2, 32], strides = [1, 1]} : vector<2x128xf32> to vector<2x32xf32>
    %96 = vector.extract_strided_slice %93 {offsets = [0, 64], sizes = [2, 32], strides = [1, 1]} : vector<2x128xf32> to vector<2x32xf32>
    %97 = vector.extract_strided_slice %92 {offsets = [0, 96], sizes = [2, 32], strides = [1, 1]} : vector<2x128xf32> to vector<2x32xf32>
    %98 = arith.mulf %95, %80 : vector<2x32xf32>
    %99 = arith.mulf %94, %96 : vector<2x32xf32>
    %100 = arith.addf %98, %99 : vector<2x32xf32>
    %101 = math.tanh %100 : vector<2x32xf32>
    %102 = arith.mulf %97, %101 : vector<2x32xf32>
    %c5_i32 = arith.constant 5 : i32
    %103 = arith.index_cast %c5_i32 : i32 to index
    %c0_22 = arith.constant 0 : index
    %c0_23 = arith.constant 0 : index
    %104 = vector.load %arg1[%103, %c0_22, %c0_23] : memref<8x2x128xf32, #tpu.memory_space<vmem>>, vector<1x2x128xf32>
    %105 = vector.shape_cast %104 : vector<1x2x128xf32> to vector<2x128xf32>
    %cst_24 = arith.constant dense<0.000000e+00> : vector<2x128xf32>
    %106 = tpu.matmul %102, %0, %cst_24 {dimension_numbers = #tpu.dot_dimension_numbers<[1], [0], [0], [1], [0, 0, 1, 1], [], []>} : vector<2x32xf32>, vector<32x128xf32>, vector<2x128xf32> -> vector<2x128xf32>
    %107 = arith.addf %105, %106 : vector<2x128xf32>
    %108 = arith.negf %107 : vector<2x128xf32>
    %109 = math.exp %108 : vector<2x128xf32>
    %cst_25 = arith.constant 1.000000e+00 : f32
    %110 = vector.broadcast %cst_25 : f32 to vector<2x128xf32>
    %111 = arith.addf %110, %109 : vector<2x128xf32>
    %112 = arith.divf %110, %111 : vector<2x128xf32>
    %113 = math.tanh %107 : vector<2x128xf32>
    %114 = vector.extract_strided_slice %112 {offsets = [0, 0], sizes = [2, 32], strides = [1, 1]} : vector<2x128xf32> to vector<2x32xf32>
    %115 = vector.extract_strided_slice %112 {offsets = [0, 32], sizes = [2, 32], strides = [1, 1]} : vector<2x128xf32> to vector<2x32xf32>
    %116 = vector.extract_strided_slice %113 {offsets = [0, 64], sizes = [2, 32], strides = [1, 1]} : vector<2x128xf32> to vector<2x32xf32>
    %117 = vector.extract_strided_slice %112 {offsets = [0, 96], sizes = [2, 32], strides = [1, 1]} : vector<2x128xf32> to vector<2x32xf32>
    %118 = arith.mulf %115, %100 : vector<2x32xf32>
    %119 = arith.mulf %114, %116 : vector<2x32xf32>
    %120 = arith.addf %118, %119 : vector<2x32xf32>
    %121 = math.tanh %120 : vector<2x32xf32>
    %122 = arith.mulf %117, %121 : vector<2x32xf32>
    %c6_i32 = arith.constant 6 : i32
    %123 = arith.index_cast %c6_i32 : i32 to index
    %c0_26 = arith.constant 0 : index
    %c0_27 = arith.constant 0 : index
    %124 = vector.load %arg1[%123, %c0_26, %c0_27] : memref<8x2x128xf32, #tpu.memory_space<vmem>>, vector<1x2x128xf32>
    %125 = vector.shape_cast %124 : vector<1x2x128xf32> to vector<2x128xf32>
    %cst_28 = arith.constant dense<0.000000e+00> : vector<2x128xf32>
    %126 = tpu.matmul %122, %0, %cst_28 {dimension_numbers = #tpu.dot_dimension_numbers<[1], [0], [0], [1], [0, 0, 1, 1], [], []>} : vector<2x32xf32>, vector<32x128xf32>, vector<2x128xf32> -> vector<2x128xf32>
    %127 = arith.addf %125, %126 : vector<2x128xf32>
    %128 = arith.negf %127 : vector<2x128xf32>
    %129 = math.exp %128 : vector<2x128xf32>
    %cst_29 = arith.constant 1.000000e+00 : f32
    %130 = vector.broadcast %cst_29 : f32 to vector<2x128xf32>
    %131 = arith.addf %130, %129 : vector<2x128xf32>
    %132 = arith.divf %130, %131 : vector<2x128xf32>
    %133 = math.tanh %127 : vector<2x128xf32>
    %134 = vector.extract_strided_slice %132 {offsets = [0, 0], sizes = [2, 32], strides = [1, 1]} : vector<2x128xf32> to vector<2x32xf32>
    %135 = vector.extract_strided_slice %132 {offsets = [0, 32], sizes = [2, 32], strides = [1, 1]} : vector<2x128xf32> to vector<2x32xf32>
    %136 = vector.extract_strided_slice %133 {offsets = [0, 64], sizes = [2, 32], strides = [1, 1]} : vector<2x128xf32> to vector<2x32xf32>
    %137 = vector.extract_strided_slice %132 {offsets = [0, 96], sizes = [2, 32], strides = [1, 1]} : vector<2x128xf32> to vector<2x32xf32>
    %138 = arith.mulf %135, %120 : vector<2x32xf32>
    %139 = arith.mulf %134, %136 : vector<2x32xf32>
    %140 = arith.addf %138, %139 : vector<2x32xf32>
    %141 = math.tanh %140 : vector<2x32xf32>
    %142 = arith.mulf %137, %141 : vector<2x32xf32>
    %c7_i32 = arith.constant 7 : i32
    %143 = arith.index_cast %c7_i32 : i32 to index
    %c0_30 = arith.constant 0 : index
    %c0_31 = arith.constant 0 : index
    %144 = vector.load %arg1[%143, %c0_30, %c0_31] : memref<8x2x128xf32, #tpu.memory_space<vmem>>, vector<1x2x128xf32>
    %145 = vector.shape_cast %144 : vector<1x2x128xf32> to vector<2x128xf32>
    %cst_32 = arith.constant dense<0.000000e+00> : vector<2x128xf32>
    %146 = tpu.matmul %142, %0, %cst_32 {dimension_numbers = #tpu.dot_dimension_numbers<[1], [0], [0], [1], [0, 0, 1, 1], [], []>} : vector<2x32xf32>, vector<32x128xf32>, vector<2x128xf32> -> vector<2x128xf32>
    %147 = arith.addf %145, %146 : vector<2x128xf32>
    %148 = arith.negf %147 : vector<2x128xf32>
    %149 = math.exp %148 : vector<2x128xf32>
    %cst_33 = arith.constant 1.000000e+00 : f32
    %150 = vector.broadcast %cst_33 : f32 to vector<2x128xf32>
    %151 = arith.addf %150, %149 : vector<2x128xf32>
    %152 = arith.divf %150, %151 : vector<2x128xf32>
    %153 = math.tanh %147 : vector<2x128xf32>
    %154 = vector.extract_strided_slice %152 {offsets = [0, 0], sizes = [2, 32], strides = [1, 1]} : vector<2x128xf32> to vector<2x32xf32>
    %155 = vector.extract_strided_slice %152 {offsets = [0, 32], sizes = [2, 32], strides = [1, 1]} : vector<2x128xf32> to vector<2x32xf32>
    %156 = vector.extract_strided_slice %153 {offsets = [0, 64], sizes = [2, 32], strides = [1, 1]} : vector<2x128xf32> to vector<2x32xf32>
    %157 = vector.extract_strided_slice %152 {offsets = [0, 96], sizes = [2, 32], strides = [1, 1]} : vector<2x128xf32> to vector<2x32xf32>
    %158 = arith.mulf %155, %140 : vector<2x32xf32>
    %159 = arith.mulf %154, %156 : vector<2x32xf32>
    %160 = arith.addf %158, %159 : vector<2x32xf32>
    %161 = math.tanh %160 : vector<2x32xf32>
    %162 = arith.mulf %157, %161 : vector<2x32xf32>
    %c8_i32 = arith.constant 8 : i32
    %c0_34 = arith.constant 0 : index
    %c0_35 = arith.constant 0 : index
    %163 = vector.load %arg3[%c0_34, %c0_35] : memref<32x1xf32, #tpu.memory_space<vmem>>, vector<32x1xf32>
    %cst_36 = arith.constant dense<0.000000e+00> : vector<2x1xf32>
    %164 = tpu.matmul %162, %163, %cst_36 {dimension_numbers = #tpu.dot_dimension_numbers<[1], [0], [0], [1], [0, 0, 1, 1], [], []>} : vector<2x32xf32>, vector<32x1xf32>, vector<2x1xf32> -> vector<2x1xf32>
    %c0_37 = arith.constant 0 : index
    %c0_38 = arith.constant 0 : index
    %165 = vector.load %arg4[%c0_37, %c0_38] : memref<1x1xf32, #tpu.memory_space<vmem>>, vector<1x1xf32>
    %166 = vector.broadcast %165 : vector<1x1xf32> to vector<2x1xf32>
    %167 = arith.addf %164, %166 : vector<2x1xf32>
    %c0_39 = arith.constant 0 : index
    %c0_40 = arith.constant 0 : index
    %168 = vector.load %arg5[%c0_39, %c0_40] : memref<2x1xf32, #tpu.memory_space<vmem>>, vector<2x1xf32>
    tpu.vector_store %arg5[%c0_39, %c0_40], %167 {strides = array<i32>} : memref<2x1xf32, #tpu.memory_space<vmem>>, vector<2x1xf32>,
    return
  }
  func.func @transform_0(%arg0: i32) -> (i32, i32, i32) {
    %c0_i32 = arith.constant 0 : i32
    %c0_i32_0 = arith.constant 0 : i32
    %c0_i32_1 = arith.constant 0 : i32
    %c0_i32_2 = arith.constant 0 : i32
    return %c0_i32, %c0_i32_0, %c0_i32_1 : i32, i32, i32
  }
  func.func @transform_1(%arg0: i32) -> (i32, i32) {
    %c0_i32 = arith.constant 0 : i32
    %c0_i32_0 = arith.constant 0 : i32
    %c0_i32_1 = arith.constant 0 : i32
    return %c0_i32, %c0_i32_0 : i32, i32
  }
  func.func @transform_2(%arg0: i32) -> (i32, i32) {
    %c0_i32 = arith.constant 0 : i32
    %c0_i32_0 = arith.constant 0 : i32
    %c0_i32_1 = arith.constant 0 : i32
    return %c0_i32, %c0_i32_0 : i32, i32
  }
  func.func @transform_3(%arg0: i32) -> (i32, i32) {
    %c0_i32 = arith.constant 0 : i32
    %c0_i32_0 = arith.constant 0 : i32
    %c0_i32_1 = arith.constant 0 : i32
    return %c0_i32, %c0_i32_0 : i32, i32
  }
  func.func @transform_4(%arg0: i32) -> (i32, i32) {
    %c0_i32 = arith.constant 0 : i32
    %c0_i32_0 = arith.constant 0 : i32
    %c0_i32_1 = arith.constant 0 : i32
    return %c0_i32, %c0_i32_0 : i32, i32
  }
}

</mosaic_0001>

<bundles_post_ra>
// kernel: tpu_custom_call.1
= control target key start
LH: loop header
LB: loop body
LE: loop exit
PB: predicated region body
PF: predicated region fallthrough
CT: control target
= control target key end

     0   :  { %s1427_s0 = inlined_call_operand.hbm [shape: f32[8,2,128], index: 0, kind: input, shape index: {}]   ;;  %s1428_s1 = inlined_call_operand.vmem [shape: f32[32,128], index: 1, kind: input, shape index: {}]   ;;  %s1429_s2 = inlined_call_operand.vmem [shape: f32[32,1], index: 2, kind: input, shape index: {}]   ;;  %s1430_s3 = inlined_call_operand.<no memory space> [shape: f32[1,1], index: 3, kind: input, shape index: {}]   ;;  %s1431_s4 = inlined_call_operand.vmem [shape: f32[2,1], index: 4, kind: output, shape index: {}]  }
   0x1   :  { %v9_v0 = vstv %s1430_s3 }
   0x2   :  { %10 = vst [vmem:[#allocation2] sm:$0x1] %v9_v0 }
   0x3   :  { %11 = vsyncpa [#allocation4], 0  ;;  %s1254_s17 = smov [#allocation3]   ;;  %s1230_s21 = scalar_lea.hbm %s1427_s0, 256 }
   0x4   :  { %s17_s18 = sshll.u32 %s1254_s17, 4  ;;  %p1231_p0 = scmp.ne.s32.totalorder %s1427_s0, %s1230_s21  ;;  %s18_s18 = int_to_ptr.vmem [resolvable:$true] %s17_s18 }
   0x5   :  { %p1234_p1 = scmp.lt.u32.totalorder %s1230_s21, %s1427_s0 }
   0x7   :  { %p1236_p2 = pnand %p1234_p1, %p1231_p0 }
   0x9   :  { %1239 = shalt.err (!%p1236_p2)
}
   0xa   :  { %s1240_s3 = scalar_lea.vmem %s18_s18, 256  ;;  %p1245_p4 = scmp.lt.s32.totalorder %s18_s18, %s18_s18 }
   0xb   :  { %p1241_p3 = scmp.ne.s32.totalorder %s18_s18, %s1240_s3  ;;  %p1246_p5 = scmp.lt.s32.totalorder %s1240_s3, %s1240_s3 }
   0xd   :  { %p1247_p6 = por %p1246_p5, %p1245_p4 }
   0xf   :  { %p1248_p7 = pnand %p1247_p6, %p1241_p3 }
  0x11   :  { %1251 = shalt.err (!%p1248_p7)
}
  0x12   :  { %s1255_s26 = smov 32   ;;  %s1256_s27 = smov 2  }
  0x13   :  { %23 = dma.hbm_to_vmem [thread:$0]  %s1427_s0, 256, %s18_s18, [#allocation4], %s1255_s26, %s1255_s26, %s1256_s27  }
  0x14   :  { %1252 = dma.done.wait [#allocation4], 256  }
  0x15   :  { %1253 = vsyncadd [#allocation4], 4294967040  ;;  %v1257_v1 = vmov 0.0|0.0   ;;  %vm1258_vm0 = vmmov 0   ;;  %v1259_v2 = vmov 0.0   ;;  %v33_v3 = vld [vmem:[%s1428_s1] sm:$0xff] }
  0x16   :  { %1105 = vmatprep.subr.bf16.mxu0 %v1257_v1  ;;  %1014 = vmatprep.mubr.msk.f32.mxu0 %vm1258_vm0, %v1259_v2  ;;  %v34_v4 = vld [vmem:[%s1428_s1 + $0x8] sm:$0xff]  ;;  %v35_v5 = vld [vmem:[%s1428_s1 + $0x10] sm:$0xff]  ;;  %v36_v7 = vld [vmem:[%s1428_s1 + $0x18] sm:$0xff]  ;;  %s1260_s1 = smov 64   ;;  %vm38_vm1 = vcmask 261120   ;;  %vm937_vm2 = vcmask 1024  }
  0x17   :  { %1111 = vmatprep.subr.bf16.mxu1 %v1257_v1  ;;  %1025 = vmatprep.mubr.msk.f32.mxu1 %vm1258_vm0, %v1259_v2  ;;  %v1318_v6 = vpack.c.bf16 %v34_v4, %v33_v3  ;;  %v1324_v8 = vpack.c.bf16 %v36_v7, %v35_v5  ;;  %v37_v9 = vld [vmem:[#allocation3] sm:$0x3]  ;;  %v138_v27 = vld [vmem:[#allocation3 + $0x2] sm:$0x3]  ;;  %v240_v45 = vld [vmem:[#allocation3 + $0x4] sm:$0x3] }
  0x18   :  { %v342_v63 = vld [vmem:[#allocation3 + $0x6] sm:$0x3] }
  0x19   :  { %1107 = vmatpush3.bf16.msra.mxu0 %v1318_v6  ;;  %1113 = vmatpush3.bf16.msra.mxu1 %v1318_v6 }
  0x1a   :  { %1108 = vmatprep.subr.bf16.mxu0 %v1257_v1  ;;  %1114 = vmatprep.subr.bf16.mxu1 %v1257_v1 }
  0x1d   :  { %1110 = vmatpush3.bf16.msra.mxu0 %v1324_v8  ;;  %1116 = vmatpush3.bf16.msra.mxu1 %v1324_v8 }
  0x1e   :  { %1117 = vmatprep.subr.bf16.mxu0 %v1257_v1  ;;  %1123 = vmatprep.subr.bf16.mxu1 %v1257_v1 }
  0x20   :  { %1015 = vmatmul.mubr.f32.vlgmr.msra.gmra.mrb[0].mxu0 %v1259_v2 }
  0x21   :  { %1119 = vmatpush3.bf16.msra.mxu0 %v1318_v6  ;;  %1036 = vmatprep.mubr.msk.f32.mxu0 %vm1258_vm0, %v1259_v2 }
  0x22   :  { %1120 = vmatprep.subr.bf16.mxu0 %v1257_v1 }
  0x25   :  { %1122 = vmatpush3.bf16.msra.mxu0 %v1324_v8 }
  0x26   :  { %1129 = vmatprep.subr.bf16.mxu0 %v1257_v1 }
  0xf3   :  { %v108_v10 = vpop.f32.mrb[0].mxu0 }
  0xf4   :  { %v112_v11 = vadd.f32 %v108_v10, %v37_v9  ;;  %v1016_v12 = vpop.f32.mrb[1].mxu0 }
  0xf6   :  { %1166 = vtanh.f32 %v112_v11  ;;  %v944_v14 = vmul.f32 -1.442695, %v112_v11 }
  0xf8   :  { %1168 = vpow2.f32 %v944_v14 }
 0x100   :  { %v1167_v13 = vpop.eup %1166 }
 0x101   :  { %122 = vrot.lane.b32.xlu0 %v1167_v13, %s1260_s1 }
 0x102   :  { %v1169_v15 = vpop.eup %1168 }
 0x103   :  { %v116_v16 = vadd.f32 1.0, %v1169_v15 }
 0x105   :  { %1170 = vrcp.f32 %v116_v16 }
 0x10f   :  { %v1171_v17 = vpop.eup %1170 }
 0x110   :  { %v120_v20 = vmul.f32 0.0, %v1171_v17 }
 0x173   :  { %v123_v18 = vpop.permute.xlu0 %122 }
 0x174   :  { %v125_v19 = vmul.f32 %v1171_v17, %v123_v18 }
 0x176   :  { %127 = vrot.lane.b32.xlu0 %v125_v19, %s1255_s26 }
 0x1e8   :  { %v128_v21 = vpop.permute.xlu0 %127 }
 0x1e9   :  { %v130_v22 = vadd.f32 %v128_v21, %v120_v20  ;;  %v444_v21 = vld [vmem:[#allocation3 + $0x8] sm:$0x3] }
 0x1eb   :  { %1172 = vtanh.f32 %v130_v22 }
 0x1f5   :  { %v1173_v23 = vpop.eup %1172 }
 0x1f6   :  { %133 = vrot.lane.b32.xlu1 %v1173_v23, %s1260_s1 }
 0x268   :  { %v134_v24 = vpop.permute.xlu1 %133 }
 0x269   :  { %v136_v25 = vmul.f32 %v1171_v17, %v134_v24 }
 0x26b   :  { %140 = vrot.lane.b32.xlu1 %v136_v25, %s1255_s26 }
 0x2dd   :  { %v141_v26 = vpop.permute.xlu1 %140 }
 0x2de   :  { %1026 = vmatmul.mubr.msk.f32.vlgmr.msra.gmra.mrb[0].mxu1 %vm38_vm1, %v141_v26 }
 0x2df   :  { %1125 = vmatpush3.bf16.msra.mxu1 %v1318_v6  ;;  %1047 = vmatprep.mubr.msk.f32.mxu1 %vm1258_vm0, %v1259_v2 }
 0x2e0   :  { %1126 = vmatprep.subr.bf16.mxu1 %v1257_v1 }
 0x2e3   :  { %1128 = vmatpush3.bf16.msra.mxu1 %v1324_v8 }
 0x2e4   :  { %1135 = vmatprep.subr.bf16.mxu1 %v1257_v1 }
 0x3b1   :  { %v210_v28 = vpop.f32.mrb[0].mxu1 }
 0x3b2   :  { %v214_v29 = vadd.f32 %v210_v28, %v138_v27  ;;  %v1027_v30 = vpop.f32.mrb[1].mxu1 }
 0x3b4   :  { %1174 = vtanh.f32 %v214_v29  ;;  %v946_v32 = vmul.f32 -1.442695, %v214_v29 }
 0x3b6   :  { %1176 = vpow2.f32 %v946_v32 }
 0x3be   :  { %v1175_v31 = vpop.eup %1174 }
 0x3bf   :  { %224 = vrot.lane.b32.xlu0 %v1175_v31, %s1260_s1 }
 0x3c0   :  { %v1177_v33 = vpop.eup %1176 }
 0x3c1   :  { %v218_v34 = vadd.f32 1.0, %v1177_v33 }
 0x3c3   :  { %1178 = vrcp.f32 %v218_v34 }
 0x3cd   :  { %v1179_v35 = vpop.eup %1178 }
 0x3ce   :  { %v222_v38 = vmul.f32 %v1179_v35, %v130_v22 }
 0x431   :  { %v225_v36 = vpop.permute.xlu0 %224 }
 0x432   :  { %v227_v37 = vmul.f32 %v1179_v35, %v225_v36 }
 0x434   :  { %229 = vrot.lane.b32.xlu1 %v227_v37, %s1255_s26 }
 0x4a6   :  { %v230_v39 = vpop.permute.xlu1 %229 }
 0x4a7   :  { %v232_v40 = vadd.f32 %v230_v39, %v222_v38  ;;  %v546_v39 = vld [vmem:[#allocation3 + $0xa] sm:$0x3] }
 0x4a9   :  { %1180 = vtanh.f32 %v232_v40 }
 0x4b3   :  { %v1181_v41 = vpop.eup %1180 }
 0x4b4   :  { %235 = vrot.lane.b32.xlu0 %v1181_v41, %s1260_s1 }
 0x526   :  { %v236_v42 = vpop.permute.xlu0 %235 }
 0x527   :  { %v238_v43 = vmul.f32 %v1179_v35, %v236_v42 }
 0x529   :  { %242 = vrot.lane.b32.xlu1 %v238_v43, %s1255_s26 }
 0x59b   :  { %v243_v44 = vpop.permute.xlu1 %242 }
 0x59c   :  { %1037 = vmatmul.mubr.msk.f32.vlgmr.msra.gmra.mrb[2].mxu0 %vm38_vm1, %v243_v44 }
 0x59d   :  { %1131 = vmatpush3.bf16.msra.mxu0 %v1318_v6  ;;  %1058 = vmatprep.mubr.msk.f32.mxu0 %vm1258_vm0, %v1259_v2 }
 0x59e   :  { %1132 = vmatprep.subr.bf16.mxu0 %v1257_v1 }
 0x5a1   :  { %1134 = vmatpush3.bf16.msra.mxu0 %v1324_v8 }
 0x5a2   :  { %1141 = vmatprep.subr.bf16.mxu0 %v1257_v1 }
 0x66f   :  { %v312_v46 = vpop.f32.mrb[2].mxu0 }
 0x670   :  { %v316_v47 = vadd.f32 %v312_v46, %v240_v45  ;;  %v1038_v48 = vpop.f32.mrb[3].mxu0 }
 0x672   :  { %1182 = vtanh.f32 %v316_v47  ;;  %v948_v50 = vmul.f32 -1.442695, %v316_v47 }
 0x674   :  { %1184 = vpow2.f32 %v948_v50 }
 0x67c   :  { %v1183_v49 = vpop.eup %1182 }
 0x67d   :  { %326 = vrot.lane.b32.xlu0 %v1183_v49, %s1260_s1 }
 0x67e   :  { %v1185_v51 = vpop.eup %1184 }
 0x67f   :  { %v320_v52 = vadd.f32 1.0, %v1185_v51 }
 0x681   :  { %1186 = vrcp.f32 %v320_v52 }
 0x68b   :  { %v1187_v53 = vpop.eup %1186 }
 0x68c   :  { %v324_v56 = vmul.f32 %v1187_v53, %v232_v40 }
 0x6ef   :  { %v327_v54 = vpop.permute.xlu0 %326 }
 0x6f0   :  { %v329_v55 = vmul.f32 %v1187_v53, %v327_v54 }
 0x6f2   :  { %331 = vrot.lane.b32.xlu1 %v329_v55, %s1255_s26  ;;  %v648_v55 = vld [vmem:[#allocation3 + $0xc] sm:$0x3] }
 0x764   :  { %v332_v57 = vpop.permute.xlu1 %331 }
 0x765   :  { %v334_v58 = vadd.f32 %v332_v57, %v324_v56 }
 0x767   :  { %1188 = vtanh.f32 %v334_v58 }
 0x771   :  { %v1189_v59 = vpop.eup %1188 }
 0x772   :  { %337 = vrot.lane.b32.xlu0 %v1189_v59, %s1260_s1 }
 0x7e4   :  { %v338_v60 = vpop.permute.xlu0 %337 }
 0x7e5   :  { %v340_v61 = vmul.f32 %v1187_v53, %v338_v60 }
 0x7e7   :  { %344 = vrot.lane.b32.xlu1 %v340_v61, %s1255_s26 }
 0x859   :  { %v345_v62 = vpop.permute.xlu1 %344 }
 0x85a   :  { %1048 = vmatmul.mubr.msk.f32.vlgmr.msra.gmra.mrb[2].mxu1 %vm38_vm1, %v345_v62 }
 0x85b   :  { %1137 = vmatpush3.bf16.msra.mxu1 %v1318_v6  ;;  %1069 = vmatprep.mubr.msk.f32.mxu1 %vm1258_vm0, %v1259_v2 }
 0x85c   :  { %1138 = vmatprep.subr.bf16.mxu1 %v1257_v1 }
 0x85f   :  { %1140 = vmatpush3.bf16.msra.mxu1 %v1324_v8 }
 0x860   :  { %1147 = vmatprep.subr.bf16.mxu1 %v1257_v1 }
 0x92d   :  { %v414_v0 = vpop.f32.mrb[2].mxu1 }
 0x92e   :  { %v418_v3 = vadd.f32 %v414_v0, %v342_v63  ;;  %v1049_v4 = vpop.f32.mrb[3].mxu1 }
 0x930   :  { %1190 = vtanh.f32 %v418_v3  ;;  %v950_v7 = vmul.f32 -1.442695, %v418_v3 }
 0x932   :  { %1192 = vpow2.f32 %v950_v7 }
 0x93a   :  { %v1191_v5 = vpop.eup %1190 }
 0x93b   :  { %428 = vrot.lane.b32.xlu0 %v1191_v5, %s1260_s1 }
 0x93c   :  { %v1193_v9 = vpop.eup %1192 }
 0x93d   :  { %v422_v10 = vadd.f32 1.0, %v1193_v9 }
 0x93f   :  { %1194 = vrcp.f32 %v422_v10 }
 0x949   :  { %v1195_v11 = vpop.eup %1194 }
 0x94a   :  { %v426_v14 = vmul.f32 %v1195_v11, %v334_v58 }
 0x9ad   :  { %v429_v12 = vpop.permute.xlu0 %428 }
 0x9ae   :  { %v431_v13 = vmul.f32 %v1195_v11, %v429_v12  ;;  %v750_v12 = vld [vmem:[#allocation3 + $0xe] sm:$0x3] }
 0x9b0   :  { %433 = vrot.lane.b32.xlu1 %v431_v13, %s1255_s26 }
 0xa22   :  { %v434_v15 = vpop.permute.xlu1 %433 }
 0xa23   :  { %v436_v16 = vadd.f32 %v434_v15, %v426_v14 }
 0xa25   :  { %1196 = vtanh.f32 %v436_v16 }
 0xa2f   :  { %v1197_v17 = vpop.eup %1196 }
 0xa30   :  { %439 = vrot.lane.b32.xlu0 %v1197_v17, %s1260_s1 }
 0xaa2   :  { %v440_v18 = vpop.permute.xlu0 %439 }
 0xaa3   :  { %v442_v19 = vmul.f32 %v1195_v11, %v440_v18 }
 0xaa5   :  { %446 = vrot.lane.b32.xlu1 %v442_v19, %s1255_s26 }
 0xb17   :  { %v447_v20 = vpop.permute.xlu1 %446 }
 0xb18   :  { %1059 = vmatmul.mubr.msk.f32.vlgmr.msra.gmra.mrb[4].mxu0 %vm38_vm1, %v447_v20 }
 0xb19   :  { %1143 = vmatpush3.bf16.msra.mxu0 %v1318_v6  ;;  %1080 = vmatprep.mubr.msk.f32.mxu0 %vm1258_vm0, %v1259_v2 }
 0xb1a   :  { %1144 = vmatprep.subr.bf16.mxu0 %v1257_v1 }
 0xb1d   :  { %1146 = vmatpush3.bf16.msra.mxu0 %v1324_v8 }
 0xb1e   :  { %1153 = vmatprep.subr.bf16.mxu0 %v1257_v1 }
 0xbeb   :  { %v516_v22 = vpop.f32.mrb[4].mxu0 }
 0xbec   :  { %v520_v23 = vadd.f32 %v516_v22, %v444_v21  ;;  %v1060_v24 = vpop.f32.mrb[5].mxu0 }
 0xbee   :  { %1198 = vtanh.f32 %v520_v23  ;;  %v952_v26 = vmul.f32 -1.442695, %v520_v23 }
 0xbf0   :  { %1200 = vpow2.f32 %v952_v26  ;;  %v851_v26 = vld [vmem:[%s1429_s2] sm:$0xff] }
 0xbf8   :  { %v1199_v25 = vpop.eup %1198 }
 0xbf9   :  { %530 = vrot.lane.b32.xlu0 %v1199_v25, %s1260_s1 }
 0xbfa   :  { %v1201_v27 = vpop.eup %1200 }
 0xbfb   :  { %v524_v28 = vadd.f32 1.0, %v1201_v27  ;;  %v852_v27 = vld [vmem:[%s1429_s2 + $0x8] sm:$0xff] }
 0xbfd   :  { %1202 = vrcp.f32 %v524_v28  ;;  %v853_v28 = vld [vmem:[%s1429_s2 + $0x10] sm:$0xff] }
 0xc07   :  { %v1203_v29 = vpop.eup %1202 }
 0xc08   :  { %v528_v32 = vmul.f32 %v1203_v29, %v436_v16 }
 0xc6b   :  { %v531_v30 = vpop.permute.xlu0 %530 }
 0xc6c   :  { %v533_v31 = vmul.f32 %v1203_v29, %v531_v30  ;;  %v854_v30 = vld [vmem:[%s1429_s2 + $0x18] sm:$0xff] }
 0xc6e   :  { %535 = vrot.lane.b32.xlu1 %v533_v31, %s1255_s26  ;;  %v1157_v31 = vpack.c.bf16 %v854_v30, %v853_v28 }
 0xce0   :  { %v536_v33 = vpop.permute.xlu1 %535 }
 0xce1   :  { %v538_v34 = vadd.f32 %v536_v33, %v528_v32 }
 0xce3   :  { %1204 = vtanh.f32 %v538_v34 }
 0xced   :  { %v1205_v35 = vpop.eup %1204 }
 0xcee   :  { %541 = vrot.lane.b32.xlu0 %v1205_v35, %s1260_s1 }
 0xd60   :  { %v542_v36 = vpop.permute.xlu0 %541 }
 0xd61   :  { %v544_v37 = vmul.f32 %v1203_v29, %v542_v36  ;;  %v1154_v29 = vpack.c.bf16 %v852_v27, %v851_v26  ;;  %v959_v36 = vld [vmem:[#allocation2] ss:$0 sm:$0xff] }
 0xd63   :  { %548 = vrot.lane.b32.xlu1 %v544_v37, %s1255_s26 }
 0xdd5   :  { %v549_v38 = vpop.permute.xlu1 %548 }
 0xdd6   :  { %1070 = vmatmul.mubr.msk.f32.vlgmr.msra.gmra.mrb[4].mxu1 %vm38_vm1, %v549_v38 }
 0xdd7   :  { %1149 = vmatpush3.bf16.msra.mxu1 %v1318_v6  ;;  %1091 = vmatprep.mubr.msk.f32.mxu1 %vm1258_vm0, %v1259_v2 }
 0xdd8   :  { %1150 = vmatprep.subr.bf16.mxu1 %v1257_v1 }
 0xddb   :  { %1152 = vmatpush3.bf16.msra.mxu1 %v1324_v8 }
 0xea9   :  { %v618_v40 = vpop.f32.mrb[4].mxu1 }
 0xeaa   :  { %v622_v41 = vadd.f32 %v618_v40, %v546_v39  ;;  %v1071_v42 = vpop.f32.mrb[5].mxu1 }
 0xeac   :  { %1206 = vtanh.f32 %v622_v41  ;;  %v954_v44 = vmul.f32 -1.442695, %v622_v41 }
 0xeae   :  { %1208 = vpow2.f32 %v954_v44 }
 0xeb6   :  { %v1207_v43 = vpop.eup %1206 }
 0xeb7   :  { %632 = vrot.lane.b32.xlu0 %v1207_v43, %s1260_s1 }
 0xeb8   :  { %v1209_v45 = vpop.eup %1208 }
 0xeb9   :  { %v626_v46 = vadd.f32 1.0, %v1209_v45 }
 0xebb   :  { %1210 = vrcp.f32 %v626_v46 }
 0xec5   :  { %v1211_v6 = vpop.eup %1210 }
 0xec6   :  { %v630_v49 = vmul.f32 %v1211_v6, %v538_v34 }
 0xf29   :  { %v633_v47 = vpop.permute.xlu0 %632 }
 0xf2a   :  { %v635_v48 = vmul.f32 %v1211_v6, %v633_v47 }
 0xf2c   :  { %637 = vrot.lane.b32.xlu1 %v635_v48, %s1255_s26 }
 0xf9e   :  { %v638_v8 = vpop.permute.xlu1 %637 }
 0xf9f   :  { %v640_v50 = vadd.f32 %v638_v8, %v630_v49 }
 0xfa1   :  { %1212 = vtanh.f32 %v640_v50 }
 0xfab   :  { %v1213_v51 = vpop.eup %1212 }
 0xfac   :  { %643 = vrot.lane.b32.xlu0 %v1213_v51, %s1260_s1 }
0x101e   :  { %v644_v52 = vpop.permute.xlu0 %643 }
0x101f   :  { %v646_v53 = vmul.f32 %v1211_v6, %v644_v52 }
0x1021   :  { %650 = vrot.lane.b32.xlu1 %v646_v53, %s1255_s26 }
0x1093   :  { %v651_v54 = vpop.permute.xlu1 %650 }
0x1094   :  { %1081 = vmatmul.mubr.msk.f32.vlgmr.msra.gmra.mrb[6].mxu0 %vm38_vm1, %v651_v54 }
0x1095   :  { %1102 = vmatprep.mubr.msk.f32.mxu0 %vm1258_vm0, %v1259_v2  ;;  %1155 = vmatpush3.bf16.msra.mxu0 %v1154_v29 }
0x1096   :  { %1156 = vmatprep.subr.bf16.mxu0 %v1257_v1 }
0x1099   :  { %1158 = vmatpush3.bf16.msra.mxu0 %v1157_v31 }
0x1167   :  { %v720_v56 = vpop.f32.mrb[6].mxu0 }
0x1168   :  { %v724_v57 = vadd.f32 %v720_v56, %v648_v55  ;;  %v1082_v58 = vpop.f32.mrb[7].mxu0 }
0x116a   :  { %1214 = vtanh.f32 %v724_v57  ;;  %v956_v60 = vmul.f32 -1.442695, %v724_v57 }
0x116c   :  { %1216 = vpow2.f32 %v956_v60 }
0x1174   :  { %v1215_v59 = vpop.eup %1214 }
0x1175   :  { %734 = vrot.lane.b32.xlu0 %v1215_v59, %s1260_s1 }
0x1176   :  { %v1217_v61 = vpop.eup %1216 }
0x1177   :  { %v728_v62 = vadd.f32 1.0, %v1217_v61 }
0x1179   :  { %1218 = vrcp.f32 %v728_v62 }
0x1183   :  { %v1219_v63 = vpop.eup %1218 }
0x1184   :  { %v732_v4 = vmul.f32 %v1219_v63, %v640_v50 }
0x11e7   :  { %v735_v0 = vpop.permute.xlu0 %734 }
0x11e8   :  { %v737_v3 = vmul.f32 %v1219_v63, %v735_v0 }
0x11ea   :  { %739 = vrot.lane.b32.xlu1 %v737_v3, %s1255_s26 }
0x125c   :  { %v740_v2 = vpop.permute.xlu1 %739 }
0x125d   :  { %v742_v5 = vadd.f32 %v740_v2, %v732_v4 }
0x125f   :  { %1220 = vtanh.f32 %v742_v5 }
0x1269   :  { %v1221_v7 = vpop.eup %1220 }
0x126a   :  { %745 = vrot.lane.b32.xlu0 %v1221_v7, %s1260_s1 }
0x12dc   :  { %v746_v9 = vpop.permute.xlu0 %745 }
0x12dd   :  { %v748_v10 = vmul.f32 %v1219_v63, %v746_v9 }
0x12df   :  { %752 = vrot.lane.b32.xlu1 %v748_v10, %s1255_s26 }
0x1351   :  { %v753_v11 = vpop.permute.xlu1 %752 }
0x1352   :  { %1092 = vmatmul.mubr.msk.f32.vlgmr.msra.gmra.mrb[6].mxu1 %vm38_vm1, %v753_v11 }
0x1425   :  { %v822_v13 = vpop.f32.mrb[6].mxu1 }
0x1426   :  { %v826_v14 = vadd.f32 %v822_v13, %v750_v12  ;;  %v1093_v15 = vpop.f32.mrb[7].mxu1 }
0x1428   :  { %1222 = vtanh.f32 %v826_v14  ;;  %v958_v17 = vmul.f32 -1.442695, %v826_v14 }
0x142a   :  { %1224 = vpow2.f32 %v958_v17 }
0x1432   :  { %v1223_v16 = vpop.eup %1222 }
0x1433   :  { %836 = vrot.lane.b32.xlu0 %v1223_v16, %s1260_s1 }
0x1434   :  { %v1225_v18 = vpop.eup %1224 }
0x1435   :  { %v830_v19 = vadd.f32 1.0, %v1225_v18 }
0x1437   :  { %1226 = vrcp.f32 %v830_v19 }
0x1441   :  { %v1227_v20 = vpop.eup %1226 }
0x1442   :  { %v834_v23 = vmul.f32 %v1227_v20, %v742_v5 }
0x14a5   :  { %v837_v21 = vpop.permute.xlu0 %836 }
0x14a6   :  { %v839_v22 = vmul.f32 %v1227_v20, %v837_v21 }
0x14a8   :  { %841 = vrot.lane.b32.xlu1 %v839_v22, %s1255_s26 }
0x151a   :  { %v842_v24 = vpop.permute.xlu1 %841 }
0x151b   :  { %v844_v25 = vadd.f32 %v842_v24, %v834_v23 }
0x151d   :  { %1228 = vtanh.f32 %v844_v25 }
0x1527   :  { %v1229_v32 = vpop.eup %1228 }
0x1528   :  { %847 = vrot.lane.b32.xlu0 %v1229_v32, %s1260_s1 }
0x159a   :  { %v848_v33 = vpop.permute.xlu0 %847 }
0x159b   :  { %v850_v34 = vmul.f32 %v1227_v20, %v848_v33 }
0x159d   :  { %863 = vrot.lane.b32.xlu1 %v850_v34, %s1255_s26 }
0x160f   :  { %v864_v35 = vpop.permute.xlu1 %863 }
0x1610   :  { %1103 = vmatmul.mubr.msk.f32.vlgmr.msra.gmra.mrb[8].mxu0 %vm38_vm1, %v864_v35 }
0x16e3   :  { %v933_v37 = vpop.f32.mrb[8].mxu0 }
0x16e4   :  { %v934_v38 = vadd.f32 %v959_v36, %v933_v37  ;;  %v1104_v39 = vpop.f32.mrb[9].mxu0 }
0x16e6   :  { %938 = vst.msk [vmem:[%s1431_s4] sm:$0x3] %vm937_vm2, %v934_v38 }
0x16e7   :  { %943 = vsyncpa [#allocation4], 1 }

</bundles_post_ra>
